<compile_context>
chip_gen: v5e
topology: v5e:2x2
jax: 0.10.0
libtpu: 0.0.40
codegen_flags: <defaults>
</compile_context>

<pallas_src>
import numpy as np
import jax
import jax.numpy as jnp
from jax.experimental import pallas as pl
from jax.experimental.pallas import tpu as pltpu


# --------------------------------------------------------------------------
# Parameter setup (host side, runs once).
# --------------------------------------------------------------------------
def _convT_scatter_6d(w, Hi, Wi, stride=2, pad=1):
    """6-D scatter tensor M[ci, ih, iw, co, oh, ow] of ConvTranspose2d(k=4,s=2,p=1).

    Only used for the *small* conv2 (input spatial H/4 x W/4).  conv1 no longer
    needs any dense scatter matrix.
    """
    w = np.asarray(w, dtype=np.float32)
    Cin, Cout, K, _ = w.shape
    Ho, Wo = Hi * stride, Wi * stride
    M = np.zeros((Cin, Hi, Wi, Cout, Ho, Wo), dtype=np.float32)
    for ih in range(Hi):
        for iw in range(Wi):
            for kh in range(K):
                for kw in range(K):
                    oh = ih * stride + kh - pad
                    ow = iw * stride + kw - pad
                    if 0 <= oh < Ho and 0 <= ow < Wo:
                        M[:, ih, iw, :, oh, ow] += w[:, :, kh, kw]
    return M


def _build_params(params, hidden_channels, output_shape, latent_dims):
    C, H, W = output_shape
    hc = hidden_channels
    L = latent_dims
    H4, W4 = H // 4, W // 4
    Hi, Wi = H // 2, W // 2          # conv2 output spatial = conv1 input spatial
    K2 = hc * Wi                     # one conv1-input row, laid out (ci, iw)
    NC = C * 2 * W                   # one output row-pair: (c, parity, ow)

    wfc = np.asarray(params['w_fc'], dtype=np.float32)       # (F1, L)
    bfc = np.asarray(params['b_fc'], dtype=np.float32)       # (F1,)
    w2 = np.asarray(params['w_conv2'], dtype=np.float32)     # (hc*2, hc, 4, 4)
    b2 = np.asarray(params['b_conv2'], dtype=np.float32)     # (hc,)
    w1 = np.asarray(params['w_conv1'], dtype=np.float32)     # (hc, 2C, 4, 4)
    b1 = np.asarray(params['b_conv1'], dtype=np.float32)     # (2C,)

    # ---- fold fc + conv2 into a single matmul (no nonlinearity between) -----
    m2_6d = _convT_scatter_6d(w2, H4, W4)                    # (2hc, H4, W4, hc, Hi, Wi)
    F1 = wfc.shape[0]
    # columns ordered (ih, ci, iw)
    m2 = m2_6d.transpose(0, 1, 2, 4, 3, 5).reshape(F1, Hi * hc * Wi)
    bias2 = np.tile(np.repeat(b2, Wi), Hi)                   # order (ih, ci, iw)
    w02 = wfc.T @ m2                                         # (L, Hi*hc*Wi)
    b02 = bfc @ m2 + bias2                                   # (Hi*hc*Wi,)

    # Per-row slabs, zero-padded by one row on each side so the kernel can
    # always read rows {m, m+1, m+2}.  Padded rows give relu(0) = 0 and thus
    # contribute nothing to conv1 (correct spatial boundary handling).
    w02_pad = np.zeros((Hi + 2, L, K2), dtype=np.float32)
    w02_pad[1:Hi + 1] = w02.reshape(L, Hi, K2).transpose(1, 0, 2)
    b02_pad = np.zeros((Hi + 2, 1, K2), dtype=np.float32)
    b02_pad[1:Hi + 1] = b02.reshape(Hi, 1, K2)

    # ---- conv1 as three small matmuls (shared across all row-pairs m) -------
    # output rows {2m, 2m+1} <- conv1 input rows {m-1, m, m+1}  (dr = 0,1,2)
    # kernel taps: kh = parity - 2*dr + 3 ; kw = ow - 2*iw + 1 (valid taps only)
    Wm = np.zeros((3, hc, Wi, C, 2, W), dtype=np.float32)
    Ws = np.zeros((3, hc, Wi, C, 2, W), dtype=np.float32)
    for dr in range(3):
        for p in range(2):
            kh = p - 2 * dr + 3
            if not (0 <= kh < 4):
                continue
            for iw in range(Wi):
                for ow in range(W):
                    kw = ow - 2 * iw + 1
                    if not (0 <= kw < 4):
                        continue
                    Wm[dr, :, iw, :, p, ow] = w1[:, :C, kh, kw]
                    Ws[dr, :, iw, :, p, ow] = w1[:, C:, kh, kw]
    wm = Wm.reshape(3, K2, NC)
    ws = Ws.reshape(3, K2, NC)
    bm = np.repeat(b1[:C], 2 * W).reshape(1, NC)
    bs = np.repeat(b1[C:], 2 * W).reshape(1, NC)

    to_j = lambda a: jnp.asarray(a, dtype=jnp.float32)
    return tuple(to_j(a) for a in (w02_pad, b02_pad, wm, ws, bm, bs))


# --------------------------------------------------------------------------
# Pallas kernel: one output row-pair (rows 2m, 2m+1) per grid step.
# --------------------------------------------------------------------------
def _decoder_kernel(z_ref, w02_ref, b02_ref, wm_ref, ws_ref, bm_ref, bs_ref,
                    mu_ref, sig_ref):
    m = pl.program_id(0)                      # output row-pair index
    z = z_ref[...]                            # (B, L)
    mu_acc = bm_ref[...]                      # (1, NC) -> broadcasts to (B, NC)
    sg_acc = bs_ref[...]
    for dr in range(3):                       # static unroll over 3 input rows
        # stage 1 (folded fc + conv2) for conv1-input row (m - 1 + dr);
        # weight slab is zero-padded at both ends, so boundary rows come out 0.
        h = jnp.dot(z, w02_ref[m + dr], preferred_element_type=jnp.float32)
        h = jnp.maximum(h + b02_ref[m + dr], 0.0)            # (B, K2)
        # stage 2: that row's contribution to output rows {2m, 2m+1}
        mu_acc = mu_acc + jnp.dot(h, wm_ref[dr],
                                  preferred_element_type=jnp.float32)
        sg_acc = sg_acc + jnp.dot(h, ws_ref[dr],
                                  preferred_element_type=jnp.float32)
    mu_ref[...] = mu_acc
    # softplus matching torch default (beta=1, threshold=20)
    sig_ref[...] = jnp.where(sg_acc > 20.0, sg_acc,
                             jnp.log1p(jnp.exp(jnp.minimum(sg_acc, 20.0))))


def latent_dependent_decoder_small(z, params, hidden_channels, output_shape):
    C, H, W = output_shape
    B, L = z.shape
    hc = hidden_channels
    Hi, Wi = H // 2, W // 2
    K2 = hc * Wi
    NC = C * 2 * W                     # 128 at the toy size -> lane-dense stores

    w02_pad, b02_pad, wm, ws, bm, bs = _build_params(params, hc, output_shape, L)

    def resident(shape):
        nd = len(shape)
        return pl.BlockSpec(shape, lambda m, _nd=nd: (0,) * _nd)

    mu_flat, sig_flat = pl.pallas_call(
        _decoder_kernel,
        grid=(Hi,),
        in_specs=[resident((B, L)),
                  resident((Hi + 2, L, K2)),
                  resident((Hi + 2, 1, K2)),
                  resident((3, K2, NC)),
                  resident((3, K2, NC)),
                  resident((1, NC)),
                  resident((1, NC))],
        out_specs=(pl.BlockSpec((B, NC), lambda m: (0, m)),
                   pl.BlockSpec((B, NC), lambda m: (0, m))),
        out_shape=(jax.ShapeDtypeStruct((B, Hi * NC), jnp.float32),
                   jax.ShapeDtypeStruct((B, Hi * NC), jnp.float32)),
        compiler_params=pltpu.CompilerParams(
            dimension_semantics=("parallel",)),   # row-pairs split across TCs on v7x
    )(z, w02_pad, b02_pad, wm, ws, bm, bs)

    # Pure layout plumbing (no compute): (b, m, c, p, ow) -> NCHW, oh = 2m + p.
    def to_nchw(flat):
        return (flat.reshape(B, Hi, C, 2, W)
                    .transpose(0, 2, 1, 3, 4)
                    .reshape(B, C, H, W))

    return to_nchw(mu_flat), to_nchw(sig_flat)


# ---------------- pure-JAX reference (independent derivation) ----------------
def convT_ref(x, w, b, stride=2, pad=1):
    # ConvTranspose2d == dilated conv with spatially-flipped, channel-swapped kernel
    K = w.shape[2]
    w_conv = jnp.transpose(w[:, :, ::-1, ::-1], (1, 0, 2, 3))  # OIHW
    y = jax.lax.conv_general_dilated(
        x, w_conv, window_strides=(1, 1),
        padding=[(K - 1 - pad, K - 1 - pad), (K - 1 - pad, K - 1 - pad)],
        lhs_dilation=(stride, stride),
        dimension_numbers=('NCHW', 'OIHW', 'NCHW'))
    return y + b[None, :, None, None]


if __name__ == "__main__":
    B, L = 2, 32                 # batch, latent_dims
    hc = 8                       # hidden_channels
    output_shape = [4, 16, 16]   # [C, H, W]
    C, H, W = output_shape
    F1 = hc * 2 * (H // 4) * (W // 4)

    key = jax.random.PRNGKey(0)
    ks = jax.random.split(key, 6)
    params = {
        'w_fc':    jax.random.normal(ks[0], (F1, L), jnp.float32) * 0.1,
        'b_fc':    jax.random.normal(ks[1], (F1,), jnp.float32) * 0.1,
        'w_conv2': jax.random.normal(ks[2], (hc * 2, hc, 4, 4), jnp.float32) * 0.1,
        'b_conv2': jax.random.normal(ks[3], (hc,), jnp.float32) * 0.1,
        'w_conv1': jax.random.normal(ks[4], (hc, 2 * C, 4, 4), jnp.float32) * 0.1,
        'b_conv1': jax.random.normal(ks[5], (2 * C,), jnp.float32) * 0.1,
    }
    z = jax.random.normal(jax.random.PRNGKey(1), (B, L), jnp.float32)

    mu, sigma = latent_dependent_decoder_small(z, params, hc, output_shape)
    jax.block_until_ready((mu, sigma))

    # reference forward
    x = z @ params['w_fc'].T + params['b_fc']
    x = x.reshape(B, hc * 2, H // 4, W // 4)
    x = jax.nn.relu(convT_ref(x, params['w_conv2'], params['b_conv2']))
    x = convT_ref(x, params['w_conv1'], params['b_conv1'])
    mu_ref = x[:, :C]
    sig_ref = jax.nn.softplus(x[:, C:])

    assert mu.shape == (B, C, H, W) and sigma.shape == (B, C, H, W)
    np.testing.assert_allclose(np.asarray(mu), np.asarray(mu_ref),
                               rtol=2e-4, atol=2e-4)
    np.testing.assert_allclose(np.asarray(sigma), np.asarray(sig_ref),
                               rtol=2e-4, atol=2e-4)
    print("KERNEL_OK")
</pallas_src>

<mosaic_0001>
module attributes {stable_mosaic.version = 11 : i64} {
  func.func @_decoder_kernel(%arg0: i32, %arg1: memref<2x32xf32, #tpu.memory_space<vmem>>, %arg2: memref<10x32x64xf32, #tpu.memory_space<vmem>>, %arg3: memref<10x1x64xf32, #tpu.memory_space<vmem>>, %arg4: memref<3x64x128xf32, #tpu.memory_space<vmem>>, %arg5: memref<3x64x128xf32, #tpu.memory_space<vmem>>, %arg6: memref<1x128xf32, #tpu.memory_space<vmem>>, %arg7: memref<1x128xf32, #tpu.memory_space<vmem>>, %arg8: memref<2x128xf32, #tpu.memory_space<vmem>>, %arg9: memref<2x128xf32, #tpu.memory_space<vmem>>) attributes {dimension_semantics = [#tpu.dimension_semantics<parallel>], iteration_bounds = array<i64: 8>, scalar_prefetch = 0 : i64, scratch_operands = 0 : i64, tpu.core_type = #tpu.core_type<tc>, window_params = [{pipeline_mode = #tpu.pipeline_mode<synchronous>, transform_indices = @transform_0, window_bounds = array<i64: 2, 32>}, {pipeline_mode = #tpu.pipeline_mode<synchronous>, transform_indices = @transform_1, window_bounds = array<i64: 10, 32, 64>}, {pipeline_mode = #tpu.pipeline_mode<synchronous>, transform_indices = @transform_2, window_bounds = array<i64: 10, 1, 64>}, {pipeline_mode = #tpu.pipeline_mode<synchronous>, transform_indices = @transform_3, window_bounds = array<i64: 3, 64, 128>}, {pipeline_mode = #tpu.pipeline_mode<synchronous>, transform_indices = @transform_4, window_bounds = array<i64: 3, 64, 128>}, {pipeline_mode = #tpu.pipeline_mode<synchronous>, transform_indices = @transform_5, window_bounds = array<i64: 1, 128>}, {pipeline_mode = #tpu.pipeline_mode<synchronous>, transform_indices = @transform_6, window_bounds = array<i64: 1, 128>}, {transform_indices = @transform_7, window_bounds = array<i64: 2, 128>}, {transform_indices = @transform_8, window_bounds = array<i64: 2, 128>}]} {
    %c0 = arith.constant 0 : index
    %c0_0 = arith.constant 0 : index
    %0 = vector.load %arg1[%c0, %c0_0] : memref<2x32xf32, #tpu.memory_space<vmem>>, vector<2x32xf32>
    %c0_1 = arith.constant 0 : index
    %c0_2 = arith.constant 0 : index
    %1 = vector.load %arg6[%c0_1, %c0_2] : memref<1x128xf32, #tpu.memory_space<vmem>>, vector<1x128xf32>
    %c0_3 = arith.constant 0 : index
    %c0_4 = arith.constant 0 : index
    %2 = vector.load %arg7[%c0_3, %c0_4] : memref<1x128xf32, #tpu.memory_space<vmem>>, vector<1x128xf32>
    %c0_i32 = arith.constant 0 : i32
    %3 = arith.addi %arg0, %c0_i32 : i32
    %4 = arith.index_cast %3 : i32 to index
    %c0_5 = arith.constant 0 : index
    %c0_6 = arith.constant 0 : index
    %5 = vector.load %arg2[%4, %c0_5, %c0_6] : memref<10x32x64xf32, #tpu.memory_space<vmem>>, vector<1x32x64xf32>
    %6 = vector.shape_cast %5 : vector<1x32x64xf32> to vector<32x64xf32>
    %cst = arith.constant dense<0.000000e+00> : vector<2x64xf32>
    %7 = tpu.matmul %0, %6, %cst {dimension_numbers = #tpu.dot_dimension_numbers<[1], [0], [0], [1], [0, 0, 1, 1], [], []>} : vector<2x32xf32>, vector<32x64xf32>, vector<2x64xf32> -> vector<2x64xf32>
    %c0_i32_7 = arith.constant 0 : i32
    %8 = arith.addi %arg0, %c0_i32_7 : i32
    %9 = arith.index_cast %8 : i32 to index
    %c0_8 = arith.constant 0 : index
    %c0_9 = arith.constant 0 : index
    %10 = vector.load %arg3[%9, %c0_8, %c0_9] : memref<10x1x64xf32, #tpu.memory_space<vmem>>, vector<1x1x64xf32>
    %11 = vector.shape_cast %10 : vector<1x1x64xf32> to vector<1x64xf32>
    %12 = vector.broadcast %11 : vector<1x64xf32> to vector<2x64xf32>
    %13 = arith.addf %7, %12 : vector<2x64xf32>
    %cst_10 = arith.constant 0.000000e+00 : f32
    %14 = vector.broadcast %cst_10 : f32 to vector<2x64xf32>
    %15 = arith.maximumf %13, %14 : vector<2x64xf32>
    %c0_11 = arith.constant 0 : index
    %c0_12 = arith.constant 0 : index
    %c0_13 = arith.constant 0 : index
    %16 = vector.load %arg4[%c0_11, %c0_12, %c0_13] : memref<3x64x128xf32, #tpu.memory_space<vmem>>, vector<1x64x128xf32>
    %17 = vector.shape_cast %16 : vector<1x64x128xf32> to vector<64x128xf32>
    %cst_14 = arith.constant dense<0.000000e+00> : vector<2x128xf32>
    %18 = tpu.matmul %15, %17, %cst_14 {dimension_numbers = #tpu.dot_dimension_numbers<[1], [0], [0], [1], [0, 0, 1, 1], [], []>} : vector<2x64xf32>, vector<64x128xf32>, vector<2x128xf32> -> vector<2x128xf32>
    %19 = vector.broadcast %1 : vector<1x128xf32> to vector<2x128xf32>
    %20 = arith.addf %19, %18 : vector<2x128xf32>
    %c0_15 = arith.constant 0 : index
    %c0_16 = arith.constant 0 : index
    %c0_17 = arith.constant 0 : index
    %21 = vector.load %arg5[%c0_15, %c0_16, %c0_17] : memref<3x64x128xf32, #tpu.memory_space<vmem>>, vector<1x64x128xf32>
    %22 = vector.shape_cast %21 : vector<1x64x128xf32> to vector<64x128xf32>
    %cst_18 = arith.constant dense<0.000000e+00> : vector<2x128xf32>
    %23 = tpu.matmul %15, %22, %cst_18 {dimension_numbers = #tpu.dot_dimension_numbers<[1], [0], [0], [1], [0, 0, 1, 1], [], []>} : vector<2x64xf32>, vector<64x128xf32>, vector<2x128xf32> -> vector<2x128xf32>
    %24 = vector.broadcast %2 : vector<1x128xf32> to vector<2x128xf32>
    %25 = arith.addf %24, %23 : vector<2x128xf32>
    %c1_i32 = arith.constant 1 : i32
    %26 = arith.addi %arg0, %c1_i32 : i32
    %27 = arith.index_cast %26 : i32 to index
    %c0_19 = arith.constant 0 : index
    %c0_20 = arith.constant 0 : index
    %28 = vector.load %arg2[%27, %c0_19, %c0_20] : memref<10x32x64xf32, #tpu.memory_space<vmem>>, vector<1x32x64xf32>
    %29 = vector.shape_cast %28 : vector<1x32x64xf32> to vector<32x64xf32>
    %cst_21 = arith.constant dense<0.000000e+00> : vector<2x64xf32>
    %30 = tpu.matmul %0, %29, %cst_21 {dimension_numbers = #tpu.dot_dimension_numbers<[1], [0], [0], [1], [0, 0, 1, 1], [], []>} : vector<2x32xf32>, vector<32x64xf32>, vector<2x64xf32> -> vector<2x64xf32>
    %c1_i32_22 = arith.constant 1 : i32
    %31 = arith.addi %arg0, %c1_i32_22 : i32
    %32 = arith.index_cast %31 : i32 to index
    %c0_23 = arith.constant 0 : index
    %c0_24 = arith.constant 0 : index
    %33 = vector.load %arg3[%32, %c0_23, %c0_24] : memref<10x1x64xf32, #tpu.memory_space<vmem>>, vector<1x1x64xf32>
    %34 = vector.shape_cast %33 : vector<1x1x64xf32> to vector<1x64xf32>
    %35 = vector.broadcast %34 : vector<1x64xf32> to vector<2x64xf32>
    %36 = arith.addf %30, %35 : vector<2x64xf32>
    %cst_25 = arith.constant 0.000000e+00 : f32
    %37 = vector.broadcast %cst_25 : f32 to vector<2x64xf32>
    %38 = arith.maximumf %36, %37 : vector<2x64xf32>
    %c1 = arith.constant 1 : index
    %c0_26 = arith.constant 0 : index
    %c0_27 = arith.constant 0 : index
    %39 = vector.load %arg4[%c1, %c0_26, %c0_27] : memref<3x64x128xf32, #tpu.memory_space<vmem>>, vector<1x64x128xf32>
    %40 = vector.shape_cast %39 : vector<1x64x128xf32> to vector<64x128xf32>
    %cst_28 = arith.constant dense<0.000000e+00> : vector<2x128xf32>
    %41 = tpu.matmul %38, %40, %cst_28 {dimension_numbers = #tpu.dot_dimension_numbers<[1], [0], [0], [1], [0, 0, 1, 1], [], []>} : vector<2x64xf32>, vector<64x128xf32>, vector<2x128xf32> -> vector<2x128xf32>
    %42 = arith.addf %20, %41 : vector<2x128xf32>
    %c1_29 = arith.constant 1 : index
    %c0_30 = arith.constant 0 : index
    %c0_31 = arith.constant 0 : index
    %43 = vector.load %arg5[%c1_29, %c0_30, %c0_31] : memref<3x64x128xf32, #tpu.memory_space<vmem>>, vector<1x64x128xf32>
    %44 = vector.shape_cast %43 : vector<1x64x128xf32> to vector<64x128xf32>
    %cst_32 = arith.constant dense<0.000000e+00> : vector<2x128xf32>
    %45 = tpu.matmul %38, %44, %cst_32 {dimension_numbers = #tpu.dot_dimension_numbers<[1], [0], [0], [1], [0, 0, 1, 1], [], []>} : vector<2x64xf32>, vector<64x128xf32>, vector<2x128xf32> -> vector<2x128xf32>
    %46 = arith.addf %25, %45 : vector<2x128xf32>
    %c2_i32 = arith.constant 2 : i32
    %47 = arith.addi %arg0, %c2_i32 : i32
    %48 = arith.index_cast %47 : i32 to index
    %c0_33 = arith.constant 0 : index
    %c0_34 = arith.constant 0 : index
    %49 = vector.load %arg2[%48, %c0_33, %c0_34] : memref<10x32x64xf32, #tpu.memory_space<vmem>>, vector<1x32x64xf32>
    %50 = vector.shape_cast %49 : vector<1x32x64xf32> to vector<32x64xf32>
    %cst_35 = arith.constant dense<0.000000e+00> : vector<2x64xf32>
    %51 = tpu.matmul %0, %50, %cst_35 {dimension_numbers = #tpu.dot_dimension_numbers<[1], [0], [0], [1], [0, 0, 1, 1], [], []>} : vector<2x32xf32>, vector<32x64xf32>, vector<2x64xf32> -> vector<2x64xf32>
    %c2_i32_36 = arith.constant 2 : i32
    %52 = arith.addi %arg0, %c2_i32_36 : i32
    %53 = arith.index_cast %52 : i32 to index
    %c0_37 = arith.constant 0 : index
    %c0_38 = arith.constant 0 : index
    %54 = vector.load %arg3[%53, %c0_37, %c0_38] : memref<10x1x64xf32, #tpu.memory_space<vmem>>, vector<1x1x64xf32>
    %55 = vector.shape_cast %54 : vector<1x1x64xf32> to vector<1x64xf32>
    %56 = vector.broadcast %55 : vector<1x64xf32> to vector<2x64xf32>
    %57 = arith.addf %51, %56 : vector<2x64xf32>
    %cst_39 = arith.constant 0.000000e+00 : f32
    %58 = vector.broadcast %cst_39 : f32 to vector<2x64xf32>
    %59 = arith.maximumf %57, %58 : vector<2x64xf32>
    %c2 = arith.constant 2 : index
    %c0_40 = arith.constant 0 : index
    %c0_41 = arith.constant 0 : index
    %60 = vector.load %arg4[%c2, %c0_40, %c0_41] : memref<3x64x128xf32, #tpu.memory_space<vmem>>, vector<1x64x128xf32>
    %61 = vector.shape_cast %60 : vector<1x64x128xf32> to vector<64x128xf32>
    %cst_42 = arith.constant dense<0.000000e+00> : vector<2x128xf32>
    %62 = tpu.matmul %59, %61, %cst_42 {dimension_numbers = #tpu.dot_dimension_numbers<[1], [0], [0], [1], [0, 0, 1, 1], [], []>} : vector<2x64xf32>, vector<64x128xf32>, vector<2x128xf32> -> vector<2x128xf32>
    %63 = arith.addf %42, %62 : vector<2x128xf32>
    %c2_43 = arith.constant 2 : index
    %c0_44 = arith.constant 0 : index
    %c0_45 = arith.constant 0 : index
    %64 = vector.load %arg5[%c2_43, %c0_44, %c0_45] : memref<3x64x128xf32, #tpu.memory_space<vmem>>, vector<1x64x128xf32>
    %65 = vector.shape_cast %64 : vector<1x64x128xf32> to vector<64x128xf32>
    %cst_46 = arith.constant dense<0.000000e+00> : vector<2x128xf32>
    %66 = tpu.matmul %59, %65, %cst_46 {dimension_numbers = #tpu.dot_dimension_numbers<[1], [0], [0], [1], [0, 0, 1, 1], [], []>} : vector<2x64xf32>, vector<64x128xf32>, vector<2x128xf32> -> vector<2x128xf32>
    %67 = arith.addf %46, %66 : vector<2x128xf32>
    %c0_47 = arith.constant 0 : index
    %c0_48 = arith.constant 0 : index
    %68 = vector.load %arg8[%c0_47, %c0_48] : memref<2x128xf32, #tpu.memory_space<vmem>>, vector<2x128xf32>
    tpu.vector_store %arg8[%c0_47, %c0_48], %63 {strides = array<i32>} : memref<2x128xf32, #tpu.memory_space<vmem>>, vector<2x128xf32>,
    %cst_49 = arith.constant 2.000000e+01 : f32
    %69 = vector.broadcast %cst_49 : f32 to vector<2x128xf32>
    %70 = arith.cmpf ogt, %67, %69 : vector<2x128xf32>
    %cst_50 = arith.constant 2.000000e+01 : f32
    %71 = vector.broadcast %cst_50 : f32 to vector<2x128xf32>
    %72 = arith.minimumf %67, %71 : vector<2x128xf32>
    %73 = math.exp %72 : vector<2x128xf32>
    %74 = math.log1p %73 : vector<2x128xf32>
    %75 = arith.select %70, %67, %74 : vector<2x128xi1>, vector<2x128xf32>
    %c0_51 = arith.constant 0 : index
    %c0_52 = arith.constant 0 : index
    %76 = vector.load %arg9[%c0_51, %c0_52] : memref<2x128xf32, #tpu.memory_space<vmem>>, vector<2x128xf32>
    tpu.vector_store %arg9[%c0_51, %c0_52], %75 {strides = array<i32>} : memref<2x128xf32, #tpu.memory_space<vmem>>, vector<2x128xf32>,
    return
  }
  func.func @transform_0(%arg0: i32) -> (i32, i32) {
    %c0_i32 = arith.constant 0 : i32
    %c0_i32_0 = arith.constant 0 : i32
    %c0_i32_1 = arith.constant 0 : i32
    return %c0_i32, %c0_i32_0 : i32, i32
  }
  func.func @transform_1(%arg0: i32) -> (i32, i32, i32) {
    %c0_i32 = arith.constant 0 : i32
    %c0_i32_0 = arith.constant 0 : i32
    %c0_i32_1 = arith.constant 0 : i32
    %c0_i32_2 = arith.constant 0 : i32
    return %c0_i32, %c0_i32_0, %c0_i32_1 : i32, i32, i32
  }
  func.func @transform_2(%arg0: i32) -> (i32, i32, i32) {
    %c0_i32 = arith.constant 0 : i32
    %c0_i32_0 = arith.constant 0 : i32
    %c0_i32_1 = arith.constant 0 : i32
    %c0_i32_2 = arith.constant 0 : i32
    return %c0_i32, %c0_i32_0, %c0_i32_1 : i32, i32, i32
  }
  func.func @transform_3(%arg0: i32) -> (i32, i32, i32) {
    %c0_i32 = arith.constant 0 : i32
    %c0_i32_0 = arith.constant 0 : i32
    %c0_i32_1 = arith.constant 0 : i32
    %c0_i32_2 = arith.constant 0 : i32
    return %c0_i32, %c0_i32_0, %c0_i32_1 : i32, i32, i32
  }
  func.func @transform_4(%arg0: i32) -> (i32, i32, i32) {
    %c0_i32 = arith.constant 0 : i32
    %c0_i32_0 = arith.constant 0 : i32
    %c0_i32_1 = arith.constant 0 : i32
    %c0_i32_2 = arith.constant 0 : i32
    return %c0_i32, %c0_i32_0, %c0_i32_1 : i32, i32, i32
  }
  func.func @transform_5(%arg0: i32) -> (i32, i32) {
    %c0_i32 = arith.constant 0 : i32
    %c0_i32_0 = arith.constant 0 : i32
    %c0_i32_1 = arith.constant 0 : i32
    return %c0_i32, %c0_i32_0 : i32, i32
  }
  func.func @transform_6(%arg0: i32) -> (i32, i32) {
    %c0_i32 = arith.constant 0 : i32
    %c0_i32_0 = arith.constant 0 : i32
    %c0_i32_1 = arith.constant 0 : i32
    return %c0_i32, %c0_i32_0 : i32, i32
  }
  func.func @transform_7(%arg0: i32) -> (i32, i32) {
    %c0_i32 = arith.constant 0 : i32
    %c0_i32_0 = arith.constant 0 : i32
    return %c0_i32, %arg0 : i32, i32
  }
  func.func @transform_8(%arg0: i32) -> (i32, i32) {
    %c0_i32 = arith.constant 0 : i32
    %c0_i32_0 = arith.constant 0 : i32
    return %c0_i32, %arg0 : i32, i32
  }
}

</mosaic_0001>

<bundles_post_ra>
// kernel: tpu_custom_call.1
= control target key start
LH: loop header
LB: loop body
LE: loop exit
PB: predicated region body
PF: predicated region fallthrough
CT: control target
= control target key end

     0   :  { %s1545_s0 = inlined_call_operand.hbm [shape: f32[2,32], index: 0, kind: input, shape index: {}]   ;;  %s1546_s1 = inlined_call_operand.hbm [shape: f32[10,32,64], index: 1, kind: input, shape index: {}]   ;;  %s1547_s2 = inlined_call_operand.hbm [shape: f32[10,1,64], index: 2, kind: input, shape index: {}]   ;;  %s1548_s3 = inlined_call_operand.hbm [shape: f32[3,64,128], index: 3, kind: input, shape index: {}]   ;;  %s1549_s4 = inlined_call_operand.hbm [shape: f32[3,64,128], index: 4, kind: input, shape index: {}]   ;;  %s1550_s5 = inlined_call_operand.vmem [shape: f32[1,128], index: 5, kind: input, shape index: {}]   ;;  %s1551_s6 = inlined_call_operand.vmem [shape: f32[1,128], index: 6, kind: input, shape index: {}]   ;;  %s1552_s7 = inlined_call_operand.hbm [shape: f32[2,1024], index: 7, kind: output, shape index: {0}]   ;;  %s1553_s8 = inlined_call_operand.hbm [shape: f32[2,1024], index: 8, kind: output, shape index: {1}]  }
   0x1   :  { %1555 = sst [smem:[#allocation21_spill]] %s1546_s1 }
   0x2   :  { %1556 = sst [smem:[#allocation22_spill]] %s1548_s3 }
   0x3   :  { %14 = vsyncpa [#allocation3], 0 }
   0x4   :  { %15 = vsyncpa [#allocation6], 0 }
   0x5   :  { %16 = vsyncpa [#allocation9], 0 }
   0x6   :  { %17 = vsyncpa [#allocation4], 0 }
   0x7   :  { %19 = vsyncpa [#allocation4 + $0x1], 0 }
   0x8   :  { %20 = vsyncpa [#allocation13], 0 }
   0x9   :  { %22 = vsyncpa [#allocation13 + $0x1], 0  ;;  %s1346_s27 = smov 0   ;;  %s1348_s28 = smov 0  }
   0xa   :  { %s1350_s29 = smov 0   ;;  %s1352_s30 = smov 0  }
   0xb LB: > { %1557 = sst [smem:[#allocation19_spill]] %s1286_s29  ;;  %s1367_s9 = sadd.s32 4294967295, %s1290_s30   ;;  %s1290_s30 = sphi %s1352_s30, %s1569_s30   ;;  %s1286_s29 = sphi %s1350_s29, %s1566_s29   ;;  %s1282_s28 = sphi %s1348_s28, %s1568_s28   ;;  %s1278_s27 = sphi %s1346_s27, %s1567_s27  }
   0xc   : > { %s869_s10 = sadd.s32 4294967294, %s1290_s30   ;;  %s1371_s11 = sadd.s32 1, %s1290_s30  }
   0xd   : > { %s182_s12 = sadd.s32 1, %s1286_s29  ;;  %s179_s13 = ssub.s32 %s1290_s30, %s1371_s11 }
   0xe   : > { %p192_p0 = scmp.ne.s32.totalorder %s1286_s29, %s1282_s28  ;;  %p180_p1 = scmp.eq.s32.totalorder %s179_s13, 0 }
   0xf   : > { %p193_p2 = scmp.eq.s32.totalorder %s1367_s9, 7  ;;  %p198_p3 = scmp.ne.s32.totalorder %s1282_s28, %s1278_s27 }
  0x10   : > { %p199_p4 = scmp.eq.s32.totalorder %s869_s10, 7  ;;  %p870_p7 = scmp.ge.s32.totalorder %s1290_s30, 1 }
  0x11   : > { %s1382_s14 = scalar_select %p180_p1, %s1286_s29, %s182_s12  }
  0x12   : > { %p1384_p5 = por %p193_p2, %p192_p0  ;;  %p1388_p6 = por %p199_p4, %p198_p3 }
  0x13   : > { %1558 = sst [smem:[#allocation20_spill]] %s1382_s14  ;;  %p232_p8 = scmp.lt.s32.totalorder %s1290_s30, 9 }
  0x14   : > { %p973_p9 = scmp.eq.s32.totalorder %s1367_s9, 0  ;;  %s1562_s1 = sld [smem:[#allocation21_spill]] }
  0x15   : > { %p1395_p10 = pnand %p870_p7, %p232_p8  ;;  %s1292_s21 = smov [#allocation5]  }
  0x16   : > { %s257_s22 = sshll.u32 %s1292_s21, 4  ;;  %s1564_s3 = sld [smem:[#allocation22_spill]]  ;;  %s258_s22 = int_to_ptr.vmem [resolvable:$true] %s257_s22 }
  0x17   : > { %p950_p11 = pneg %p1395_p10  ;;  %s1293_s10 = smov 128  }
  0x18   : > { %s1294_s12 = smov 8   ;;  %s1295_s13 = smov [#allocation8]  }
  0x19   : > { %p1406_p12 = pnand %p973_p9, %p950_p11  ;;  %s285_s18 = sshll.u32 %s1295_s13, 4  ;;  %s286_s18 = int_to_ptr.vmem [resolvable:$true] %s285_s18 }
  0x1a   : > { %s255_s20 = sshll.u32 %s1562_s1, 4  ;;  %s244_s1 = sshll.u32 %s1545_s0, 4  ;;  %s256_s20 = int_to_ptr.hbm [resolvable:$true] %s255_s20  ;;  %s245_s1 = int_to_ptr.hbm [resolvable:$true] %s244_s1 }
  0x1b   : > { %956 = dma.hbm_to_vmem [thread:$0]  (!%p1406_p12), %s256_s20, 5120, %s258_s22, [#allocation6], %s1293_s10, %s1293_s10, %s1294_s12  }
  0x1c   : > { %s283_s26 = sshll.u32 %s1564_s3, 4  ;;  %s269_s3 = sshll.u32 %s1547_s2, 4  ;;  %s284_s26 = int_to_ptr.hbm [resolvable:$true] %s283_s26  ;;  %s270_s3 = int_to_ptr.hbm [resolvable:$true] %s269_s3 }
  0x1d   : > { %962 = dma.hbm_to_vmem [thread:$0]  (!%p1406_p12), %s284_s26, 3072, %s286_s18, [#allocation9], %s1293_s10, %s1293_s10, %s1294_s12  }
  0x1e   : > { %s1296_s14 = smov [#allocation2]   ;;  %s1297_s20 = smov [#allocation7]  }
  0x1f   : > { %s246_s29 = sshll.u32 %s1296_s14, 4  ;;  %s271_s22 = sshll.u32 %s1297_s20, 4  ;;  %s247_s29 = int_to_ptr.vmem [resolvable:$true] %s246_s29  ;;  %s272_s22 = int_to_ptr.vmem [resolvable:$true] %s271_s22 }
  0x20   : > { %953 = dma.hbm_to_vmem [thread:$0]  (!%p1406_p12), %s245_s1, 32, %s247_s29, [#allocation3]  }
  0x21   : > { %s1298_s13 = smov 16   ;;  %s1299_s19 = smov 1  }
  0x22   : > { %959 = dma.hbm_to_vmem [thread:$0]  (!%p1406_p12), %s270_s3, 160, %s272_s22, [#allocation6], %s1298_s13, %s1298_s13, %s1299_s19  }
  0x23   : > { %s297_s18 = sshll.u32 %s1549_s4, 4  ;;  %s1300_s24 = smov [#allocation10]   ;;  %s298_s18 = int_to_ptr.hbm [resolvable:$true] %s297_s18 }
  0x24   : > { %s299_s25 = sshll.u32 %s1300_s24, 4  ;;  %321 = sbr.rel (%p1395_p10) target bundleno = 479 (0x1df), region = 48  ;;  %s300_s25 = int_to_ptr.vmem [resolvable:$true] %s299_s25 }
  0x25   : > { %965 = dma.hbm_to_vmem [thread:$0]  (!%p1406_p12), %s298_s18, 3072, %s300_s25, [#allocation9], %s1293_s10, %s1293_s10, %s1294_s12  }
  0x29   : > { %1257 = dma.done.wait (%p973_p9), [#allocation3], 32  }
  0x2a   : > { %1259 = vsyncadd (%p973_p9), [#allocation3], 4294967264 }
  0x2b   : > { %1261 = dma.done.wait (%p973_p9), [#allocation6], 5280  }
  0x2c   : > { %1263 = vsyncadd (%p973_p9), [#allocation6], 4294962016 }
  0x2d   : > { %1265 = dma.done.wait (%p973_p9), [#allocation9], 6144  }
  0x2e   : > { %1267 = vsyncadd (%p973_p9), [#allocation9], 4294961152  ;;  %s884_s1 = sshll.u32 %s1367_s9, 5  ;;  %v458_v6 = vld [vmem:[#allocation10 + $0x38] sm:$0xff]  ;;  %v457_v9 = vld [vmem:[#allocation10 + $0x30] sm:$0xff]  ;;  %vm390_vm0 = vcmask 261120  }
  0x2f   : > { %s1447_s3 = scalar_lea.vmem [#allocation5], %s884_s1  ;;  %467 = vmatpush.msra.mxu2 %v458_v6  ;;  %v1457_v10 = vld [vmem:[#allocation2] sm:$0x3]  ;;  %v524_v11 = vld [vmem:[#allocation8 + $0x78] sm:$0xff]  ;;  %v456_v14 = vld [vmem:[#allocation10 + $0x28] sm:$0xff]  ;;  %s1460_s29 = scalar_lea.vmem [#allocation7], %s1290_s30 }
  0x30   : > { %v384_v0 = vld [vmem:[%s1447_s3 + $0x18] sm:$0xff]  ;;  %v383_v2 = vld [vmem:[%s1447_s3 + $0x10] sm:$0xff]  ;;  %v382_v4 = vld [vmem:[%s1447_s3 + $0x8] sm:$0xff]  ;;  %536 = vmatpush.msra.mxu0 %v524_v11  ;;  %vm423_vm1 = vcmask 523264   ;;  %s1485_s23 = sand.u32 1, %s1282_s28   ;;  %s911_s10 = sshll.u32 %s1367_s9, 1 }
  0x31   : > { %v893_v1 = vld [vmem:[%s1447_s3 + $0x38] sm:$0xff]  ;;  %406 = vmatpush.msra.mxu1 %v384_v0  ;;  %v892_v3 = vld [vmem:[%s1447_s3 + $0x30] sm:$0xff]  ;;  %v891_v5 = vld [vmem:[%s1447_s3 + $0x28] sm:$0xff]  ;;  %468 = vmatpush.msra.mxu2 %v457_v9  ;;  %s882_s22 = sshll.u32 %s1485_s23, 1  ;;  %s707_s21 = scalar_lea.hbm %s1552_s7, %s911_s10 }
  0x32   : > { %507 = vmatpush.msra.mxu3 %v893_v1  ;;  %v381_v7 = vld [vmem:[%s1447_s3] sm:$0xff]  ;;  %v455_v17 = vld [vmem:[#allocation10 + $0x20] sm:$0xff]  ;;  %v420_v19 = vld [vmem:[#allocation8 + $0x28] sm:$0xff]  ;;  %s368_s26 = scalar_lea.vmem [#allocation11], %s882_s22  ;;  %s711_s24 = sshll.u32 %s707_s21, 4  ;;  %s712_s24 = int_to_ptr.hbm [resolvable:$true] %s711_s24 }
  0x33   : > { %407 = vmatpush.msra.mxu1 %v383_v2  ;;  %v890_v8 = vld [vmem:[%s1447_s3 + $0x20] sm:$0xff]  ;;  %469 = vmatpush.msra.mxu2 %v456_v14  ;;  %v419_v21 = vld [vmem:[#allocation8 + $0x20] sm:$0xff]  ;;  %v522_v25 = vld [vmem:[#allocation8 + $0x68] sm:$0xff]  ;;  %s709_s18 = sshll.u32 %s368_s26, 4  ;;  %s692_s25 = scalar_lea.sflag [#allocation4], %s1485_s23  ;;  %s710_s18 = int_to_ptr.vmem [resolvable:$true] %s709_s18 }
  0x34   : > { %508 = vmatpush.msra.mxu3 %v892_v3  ;;  %v422_v12 = vld [vmem:[#allocation8 + $0x38] sm:$0xff]  ;;  %v421_v13 = vld [vmem:[#allocation8 + $0x30] sm:$0xff]  ;;  %v555_v26 = vld [vmem:[#allocation10 + $0x68] sm:$0xff]  ;;  %s1198_s1 = sshra.s32 %s712_s24, 4  ;;  %s1204_s17 = scalar_lea.hbm %s1552_s7, 16  ;;  %s1199_s1 = int_to_ptr.hbm [resolvable:$true] %s1198_s1 }
  0x35   : > { %408 = vmatpush.msra.mxu1 %v382_v4  ;;  %v557_v15 = vld [vmem:[#allocation10 + $0x78] sm:$0xff]  ;;  %v523_v16 = vld [vmem:[#allocation8 + $0x70] sm:$0xff]  ;;  %470 = vmatpush.msra.mxu2 %v455_v17  ;;  %v416_v27 = vld [vmem:[#allocation8 + $0x8] sm:$0xff]  ;;  %p1205_p2 = scmp.lt.s32.totalorder %s1199_s1, %s1552_s7 }
  0x36   : > { %509 = vmatpush.msra.mxu3 %v891_v5  ;;  %v556_v18 = vld [vmem:[#allocation10 + $0x70] sm:$0xff]  ;;  %v454_v20 = vld [vmem:[#allocation10 + $0x18] sm:$0xff]  ;;  %537 = vmatpush.msra.mxu0 %v523_v16  ;;  %v452_v28 = vld [vmem:[#allocation10 + $0x8] sm:$0xff] }
  0x37   : > { %409 = vmatpush.msra.mxu1 %v381_v7  ;;  %471 = vmatpush.msra.mxu2 %v454_v20  ;;  %v418_v22 = vld [vmem:[#allocation8 + $0x18] sm:$0xff]  ;;  %v417_v23 = vld [vmem:[#allocation8 + $0x10] sm:$0xff]  ;;  %v521_v29 = vld [vmem:[#allocation8 + $0x60] sm:$0xff] }
  0x38   : > { %510 = vmatpush.msra.mxu3 %v890_v8  ;;  %886 = vmatmul.msk.f32.vlgmr.msra.gmra.mxu1 %vm390_vm0, %v1457_v10  ;;  %v453_v24 = vld [vmem:[#allocation10 + $0x10] sm:$0xff]  ;;  %v554_v30 = vld [vmem:[#allocation10 + $0x60] sm:$0xff]  ;;  %v520_v33 = vld [vmem:[#allocation8 + $0x58] sm:$0xff] }
  0x39   : > { %896 = vmatmul.msk.f32.vlgmr.msra.gmra.mxu3 %vm390_vm0, %v1457_v10  ;;  %435 = vmatpush.msrb.mxu1 %v422_v12  ;;  %v415_v31 = vld [vmem:[#allocation8] sm:$0xff]  ;;  %v553_v34 = vld [vmem:[#allocation10 + $0x58] sm:$0xff]  ;;  %v903_v35 = vld [vmem:[%s1447_s3 + $0x58] sm:$0xff] }
  0x3a   : > { %566 = vmatpush.msrb.mxu3 %v557_v15  ;;  %472 = vmatpush.msra.mxu2 %v453_v24  ;;  %v451_v32 = vld [vmem:[#allocation10] sm:$0xff]  ;;  %v519_v36 = vld [vmem:[#allocation8 + $0x50] sm:$0xff]  ;;  %v518_v39 = vld [vmem:[#allocation8 + $0x48] sm:$0xff] }
  0x3b   : > { %436 = vmatpush.msrb.mxu1 %v421_v13  ;;  %538 = vmatpush.msra.mxu0 %v522_v25  ;;  %v552_v37 = vld [vmem:[#allocation10 + $0x50] sm:$0xff]  ;;  %v902_v38 = vld [vmem:[%s1447_s3 + $0x50] sm:$0xff]  ;;  %v901_v41 = vld [vmem:[%s1447_s3 + $0x48] sm:$0xff] }
  0x3c   : > { %567 = vmatpush.msrb.mxu3 %v556_v18  ;;  %473 = vmatpush.msra.mxu2 %v452_v28  ;;  %v551_v40 = vld [vmem:[#allocation10 + $0x48] sm:$0xff]  ;;  %v517_v42 = vld [vmem:[#allocation8 + $0x40] sm:$0xff]  ;;  %v900_v44 = vld [vmem:[%s1447_s3 + $0x40] sm:$0xff]  ;;  %s1200_s3 = scalar_lea.hbm %s1199_s1, 2 }
  0x3d   : > { %437 = vmatpush.msrb.mxu1 %v420_v19  ;;  %539 = vmatpush.msra.mxu0 %v521_v29  ;;  %v550_v43 = vld [vmem:[#allocation10 + $0x40] sm:$0xff]  ;;  %v620_v45 = vld [vmem:[#allocation8 + $0xb8] sm:$0xff]  ;;  %v1025_v47 = vld [vmem:[%s1460_s29 - $0x1] ss:$0 sm:$0xff]  ;;  %p1201_p13 = scmp.ne.s32.totalorder %s1199_s1, %s1200_s3  ;;  %p1206_p3 = scmp.lt.s32.totalorder %s1204_s17, %s1200_s3 }
  0x3e   : > { %568 = vmatpush.msrb.mxu3 %v555_v26  ;;  %474 = vmatpush.msra.mxu2 %v451_v32  ;;  %v653_v46 = vld [vmem:[#allocation10 + $0xb8] sm:$0xff]  ;;  %v1026_v51 = vld [vmem:[%s1460_s29] ss:$0 sm:$0xff]  ;;  %v618_v57 = vld [vmem:[#allocation8 + $0xa8] sm:$0xff] }
  0x3f   : > { %438 = vmatpush.msrb.mxu1 %v419_v21  ;;  %540 = vmatpush.msra.mxu0 %v520_v33  ;;  %v619_v55 = vld [vmem:[#allocation8 + $0xb0] sm:$0xff]  ;;  %v651_v58 = vld [vmem:[#allocation10 + $0xa8] sm:$0xff]  ;;  %v617_v59 = vld [vmem:[#allocation8 + $0xa0] sm:$0xff]  ;;  %p1202_p0 = pnand %p1201_p13, %p1384_p5  ;;  %p1207_p4 = por %p1206_p3, %p1205_p2 }
  0x40   : > { %569 = vmatpush.msrb.mxu3 %v554_v30  ;;  %632 = vmatpush.msrb.mxu2 %v620_v45  ;;  %v652_v56 = vld [vmem:[#allocation10 + $0xb0] sm:$0xff]  ;;  %v650_v60 = vld [vmem:[#allocation10 + $0xa0] sm:$0xff]  ;;  %v616_v61 = vld [vmem:[#allocation8 + $0x98] sm:$0xff] }
  0x41   : > { %439 = vmatpush.msrb.mxu1 %v418_v22  ;;  %541 = vmatpush.msra.mxu0 %v519_v36  ;;  %v649_v62 = vld [vmem:[#allocation10 + $0x98] sm:$0xff]  ;;  %v615_v63 = vld [vmem:[#allocation8 + $0x90] sm:$0xff]  ;;  %v614_v1 = vld [vmem:[#allocation8 + $0x88] sm:$0xff]  ;;  %p1203_p1 = pneg %p1202_p0 }
  0x42   : > { %570 = vmatpush.msrb.mxu3 %v553_v34  ;;  %633 = vmatpush.msrb.mxu2 %v619_v55  ;;  %v648_v0 = vld [vmem:[#allocation10 + $0x90] sm:$0xff]  ;;  %v647_v2 = vld [vmem:[#allocation10 + $0x88] sm:$0xff]  ;;  %v613_v3 = vld [vmem:[#allocation8 + $0x80] sm:$0xff] }
  0x43   : > { %440 = vmatpush.msrb.mxu1 %v417_v23  ;;  %542 = vmatpush.msra.mxu0 %v518_v39  ;;  %v646_v4 = vld [vmem:[#allocation10 + $0x80] sm:$0xff]  ;;  %v1029_v6 = vld [vmem:[%s1460_s29 + $0x1] ss:$0 sm:$0xff]  ;;  %v1028_v11 = vld [vmem:[%s1551_s6] ss:$0 sm:$0xff]  ;;  %p1208_p7 = pnand %p1207_p4, %p1203_p1 }
  0x44   : > { %571 = vmatpush.msrb.mxu3 %v552_v37  ;;  %634 = vmatpush.msrb.mxu2 %v618_v57  ;;  %v1027_v15 = vld [vmem:[%s1550_s5] ss:$0 sm:$0xff] }
  0x45   : > { %441 = vmatpush.msrb.mxu1 %v416_v27  ;;  %543 = vmatpush.msra.mxu0 %v517_v42 }
  0x46   : > { %572 = vmatpush.msrb.mxu3 %v551_v40  ;;  %635 = vmatpush.msrb.mxu2 %v617_v59 }
  0x47   : > { %442 = vmatpush.msrb.mxu1 %v415_v31  ;;  %662 = vmatpush.msrb.mxu0 %v653_v46 }
  0x48   : > { %573 = vmatpush.msrb.mxu3 %v550_v43  ;;  %636 = vmatpush.msrb.mxu2 %v616_v61 }
  0x49   : > { %603 = vmatpush.msra.mxu1 %v903_v35  ;;  %663 = vmatpush.msrb.mxu0 %v652_v56 }
  0x4a   : > { %637 = vmatpush.msrb.mxu2 %v615_v63 }
  0x4b   : > { %604 = vmatpush.msra.mxu1 %v902_v38  ;;  %664 = vmatpush.msrb.mxu0 %v651_v58 }
  0x4c   : > { %638 = vmatpush.msrb.mxu2 %v614_v1 }
  0x4d   : > { %605 = vmatpush.msra.mxu1 %v901_v41  ;;  %665 = vmatpush.msrb.mxu0 %v650_v60 }
  0x4e   : > { %639 = vmatpush.msrb.mxu2 %v613_v3 }
  0x4f   : > { %606 = vmatpush.msra.mxu1 %v900_v44  ;;  %666 = vmatpush.msrb.mxu0 %v649_v62 }
  0x51   : > { %667 = vmatpush.msrb.mxu0 %v648_v0 }
  0x53   : > { %668 = vmatpush.msrb.mxu0 %v647_v2 }
  0x55   : > { %669 = vmatpush.msrb.mxu0 %v646_v4 }
  0xb5   : > { %v411_v48 = vpop.f32.mrf.mxu1 }
  0xb6   : > { %v412_v49 = vadd.f32 %v1025_v47, %v411_v48 }
  0xb8   : > { %v414_v50 = vmax.f32 %v412_v49, 0.0 }
  0xba   : > { %887 = vmatmul.msk.f32.vlgmr.msrb.gmra.mxu1 %vm423_vm1, %v414_v50  ;;  %888 = vmatmul.msk.f32.vlgmr.msra.gmra.mxu2 %vm423_vm1, %v414_v50 }
  0xbc   : > { %v512_v52 = vpop.f32.mrf.mxu3 }
  0xbd   : > { %v513_v53 = vadd.f32 %v1026_v51, %v512_v52 }
  0xbf   : > { %v515_v54 = vmax.f32 %v513_v53, 0.0 }
  0xc1   : > { %897 = vmatmul.msk.f32.vlgmr.msra.gmra.mxu0 %vm423_vm1, %v515_v54  ;;  %898 = vmatmul.msk.f32.vlgmr.msrb.gmra.mxu3 %vm423_vm1, %v515_v54 }
  0xc2   : > { %906 = vmatmul.msk.f32.vlgmr.msra.gmra.mxu1 %vm390_vm0, %v1457_v10 }
 0x137   : > { %v444_v5 = vpop.f32.mrf.mxu1 }
 0x138   : > { %v450_v19 = vadd.f32 %v1027_v15, %v444_v5 }
 0x13d   : > { %v476_v12 = vpop.f32.mrf.mxu2 }
 0x13e   : > { %v545_v10 = vpop.f32.mrf.mxu0  ;;  %v482_v14 = vadd.f32 %v1028_v11, %v476_v12 }
 0x13f   : > { %v608_v7 = vpop.f32.mrf.mxu1  ;;  %v548_v21 = vadd.f32 %v545_v10, %v450_v19 }
 0x140   : > { %v609_v8 = vadd.f32 %v1029_v6, %v608_v7 }
 0x142   : > { %v611_v9 = vmax.f32 %v609_v8, 0.0 }
 0x144   : > { %907 = vmatmul.msk.f32.vlgmr.msrb.gmra.mxu2 %vm423_vm1, %v611_v9  ;;  %908 = vmatmul.msk.f32.vlgmr.msrb.gmra.mxu0 %vm423_vm1, %v611_v9  ;;  %v575_v13 = vpop.f32.mrf.mxu3 }
 0x145   : > { %v578_v16 = vadd.f32 %v575_v13, %v482_v14 }
 0x1c1   : > { %v671_v17 = vpop.f32.mrf.mxu0 }
 0x1c2   : > { %v674_v18 = vadd.f32 %v671_v17, %v578_v16 }
 0x1c4   : > { %v677_v20 = vmin.f32 %v674_v18, 20.0 }
 0x1c6   : > { %v678_v22 = vmul.f32 1.442695, %v677_v20 }
 0x1c7   : > { %v641_v23 = vpop.f32.mrf.mxu2 }
 0x1c8   : > { %1030 = vpow2.f32 %v678_v22  ;;  %v644_v24 = vadd.f32 %v641_v23, %v548_v21 }
 0x1ca   : > { %675 = vst [vmem:[%s368_s26] sm:$0x3] %v644_v24 }
 0x1cb   : > { %1211 = shalt.err (!%p1208_p7)
}
 0x1cc   : > { %946 = dma.vmem_to_hbm [thread:$0]  (%p1384_p5), %s710_s18, 32, %s712_s24, %s692_s25   ;;  %vm676_vm3 = vcmp.gt.f32.partialorder %v674_v18, 20.0 }
 0x1cd   : > { %s721_s21 = scalar_lea.hbm %s1553_s8, %s911_s10  ;;  %s375_s26 = scalar_lea.vmem [#allocation12], %s882_s22 }
 0x1ce   : > { %v1031_v25 = vpop.eup %1030  ;;  %s723_s1 = sshll.u32 %s375_s26, 4  ;;  %s725_s3 = sshll.u32 %s721_s21, 4  ;;  %s724_s1 = int_to_ptr.vmem [resolvable:$true] %s723_s1  ;;  %s726_s3 = int_to_ptr.hbm [resolvable:$true] %s725_s3 }
 0x1cf   : > { %v680_v26 = vadd.f32 1.0, %v1031_v25  ;;  %v683_v27 = vmul.f32 -0.5, %v1031_v25  ;;  %v686_v29 = vand.u32 2147483647, %v1031_v25  ;;  %s697_s9 = scalar_lea.sflag [#allocation13], %s1485_s23  ;;  %s1226_s18 = sshra.s32 %s726_s3, 4  ;;  %s1227_s18 = int_to_ptr.hbm [resolvable:$true] %s1226_s18 }
 0x1d0   : > { %s1228_s10 = scalar_lea.hbm %s1227_s18, 2  ;;  %s1232_s25 = scalar_lea.hbm %s1553_s8, 16 }
 0x1d1   : > { %1032 = vlog2.f32 %v680_v26  ;;  %v684_v28 = vadd.f32 1.0, %v683_v27  ;;  %vm687_vm2 = vcmp.lt.f32.partialorder %v686_v29, 0.0004427343  ;;  %p1229_p8 = scmp.ne.s32.totalorder %s1227_s18, %s1228_s10  ;;  %p1233_p11 = scmp.lt.s32.totalorder %s1227_s18, %s1553_s8 }
 0x1d2   : > { %p1234_p12 = scmp.lt.s32.totalorder %s1232_s25, %s1228_s10 }
 0x1d3   : > { %v685_v32 = vmul.f32 %v1031_v25, %v684_v28  ;;  %p1230_p9 = pnand %p1229_p8, %p1384_p5 }
 0x1d4   : > { %p1235_p13 = por %p1234_p12, %p1233_p11 }
 0x1d5   : > { %p1231_p10 = pneg %p1230_p9 }
 0x1d7   : > { %v1033_v30 = vpop.eup %1032  ;;  %p1236_p0 = pnand %p1235_p13, %p1231_p10 }
 0x1d8   : > { %v682_v31 = vmul.f32 0.6931472, %v1033_v30 }
 0x1da   : > { %v688_v33 = vsel %vm687_vm2, %v685_v32, %v682_v31 }
 0x1db   : > { %v689_v34 = vsel %vm676_vm3, %v674_v18, %v688_v33 }
 0x1dc   : > { %690 = vst [vmem:[%s375_s26] sm:$0x3] %v689_v34 }
 0x1dd   : > { %1239 = shalt.err (!%p1236_p0)
}
 0x1de   : > { %947 = dma.vmem_to_hbm [thread:$0]  (%p1384_p5), %s724_s1, 32, %s726_s3, %s697_s9  }
 0x1df PF: > { %p983_p1 = scmp.ge.s32.totalorder %s1290_s30, 2  ;;  %s737_s23 = sand.u32 1, %s1278_s27  }
 0x1e0   : > { %s738_s17 = scalar_lea.sflag [#allocation4], %s737_s23 }
 0x1e1   : > { %p967_p2 = pnand %p983_p1, %p1388_p6 }
 0x1e3   : > { %p968_p3 = pneg %p967_p2 }
 0x1e5   : > { %1269 = dma.done.wait (%p968_p3), %s738_s17, 32  }
 0x1e6   : > { %1271 = vsyncadd (%p968_p3), %s738_s17, 4294967264  ;;  %s748_s12 = scalar_lea.sflag [#allocation13], %s737_s23 }
 0x1e7   : > { %1273 = dma.done.wait (%p968_p3), %s748_s12, 32  }
 0x1e8   : > { %1275 = vsyncadd (%p968_p3), %s748_s12, 4294967264  ;;  %s1565_s20 = sld [smem:[#allocation19_spill]]  ;;  %p25_p5 = scmp.ge.s32.totalorder %s1371_s11, 10  }
 0x1e9   : > { %s1566_s29 = sld [smem:[#allocation20_spill]]  ;;  %s1567_s27 = smov %s1282_s28 }
 0x1ea   : > { %s1569_s30 = smov %s1371_s11  ;;  %27 = sbr.rel (!%p25_p5) target bundleno = 11 (0xb), region = 128 }
 0x1ee   : > { %s1568_s28 = smov %s1565_s20 }
 0x1ef   :  { %754 = vsyncpa [#allocation3], 1 }
 0x1f0   :  { %756 = vsyncpa [#allocation3 + $0x1], 1 }
 0x1f1   :  { %757 = vsyncpa [#allocation6], 1 }
 0x1f2   :  { %758 = vsyncpa [#allocation9], 1 }
 0x1f3   :  { %759 = vsyncpa [#allocation4], 1 }
 0x1f4   :  { %761 = vsyncpa [#allocation4 + $0x1], 1 }
 0x1f5   :  { %762 = vsyncpa [#allocation13], 1 }
 0x1f6   :  { %764 = vsyncpa [#allocation13 + $0x1], 1 }

</bundles_post_ra>
